<compile_context>
chip_gen: v7x
topology: tpu7x:2x2x1
jax: 0.10.0
libtpu: 0.0.40
codegen_flags: <defaults>
</compile_context>

<pallas_src>
import math

import jax
import jax.numpy as jnp
from jax.experimental import pallas as pl
from jax.experimental.pallas import tpu as pltpu


def _round_up(x, m):
    return ((x + m - 1) // m) * m


def _softmax_rows(logits):
    """Numerically stable row softmax in f32.

    Uses reciprocal-multiply (EUP vrcp) instead of a per-element divide so the
    only heavy EUP work per row is the exp itself.
    """
    m = jnp.max(logits, axis=-1, keepdims=True)
    e = jnp.exp(logits - m)
    inv = pl.reciprocal(jnp.sum(e, axis=-1, keepdims=True), approx=True)
    return e * inv


# ---------------------------------------------------------------------------
# Kernels (one per complexity). Weights are bf16 (MXU-native), biases f32,
# matmuls accumulate in f32; activations stay in vregs; only the exact-width
# probability tile is stored.
# ---------------------------------------------------------------------------
def _policy_kernel_c1(x_ref, w_ref, b_ref, o_ref):
    x = x_ref[...].astype(jnp.bfloat16)
    logits = jnp.dot(x, w_ref[...],
                     preferred_element_type=jnp.float32) + b_ref[...]
    o_ref[...] = _softmax_rows(logits).astype(o_ref.dtype)


def _policy_kernel_c2(x_ref, w1_ref, b1_ref, w2_ref, b2_ref, o_ref):
    x = x_ref[...].astype(jnp.bfloat16)
    h = jnp.dot(x, w1_ref[...],
                preferred_element_type=jnp.float32) + b1_ref[...]
    logits = jnp.dot(h.astype(jnp.bfloat16), w2_ref[...],
                     preferred_element_type=jnp.float32) + b2_ref[...]
    o_ref[...] = _softmax_rows(logits).astype(o_ref.dtype)


def _policy_kernel_c3(x_ref, w1_ref, b1_ref, w2_ref, b2_ref, w3_ref, b3_ref,
                      w4_ref, b4_ref, w5_ref, b5_ref, o_ref):
    x = x_ref[...].astype(jnp.bfloat16)
    h = jnp.dot(x, w1_ref[...],
                preferred_element_type=jnp.float32) + b1_ref[...]
    h = jnp.maximum(h, 0.0)                                   # relu(fc1)
    h = jnp.tanh(jnp.dot(h.astype(jnp.bfloat16), w2_ref[...],
                         preferred_element_type=jnp.float32) + b2_ref[...])
    h = jnp.tanh(jnp.dot(h.astype(jnp.bfloat16), w3_ref[...],
                         preferred_element_type=jnp.float32) + b3_ref[...])
    h = jnp.tanh(jnp.dot(h.astype(jnp.bfloat16), w4_ref[...],
                         preferred_element_type=jnp.float32) + b4_ref[...])
    logits = jnp.dot(h.astype(jnp.bfloat16), w5_ref[...],
                     preferred_element_type=jnp.float32) + b5_ref[...]
    o_ref[...] = _softmax_rows(logits).astype(o_ref.dtype)


_KERNELS = {1: _policy_kernel_c1, 2: _policy_kernel_c2, 3: _policy_kernel_c3}


# ---------------------------------------------------------------------------
# Wrapper
# ---------------------------------------------------------------------------
def policy_forward(x, params, complexity, output_size, *, block_b=1024):
    """Pallas forward pass for Policy.

    x       : [B, D_in] f32
    params  : flat tuple (w1, b1, w2, b2, ...) — weights pre-transposed to
              [in, out] (bf16 after prepare_policy_params), biases [1, out] f32.
    returns : [B, output_size] softmax probabilities (f32).
    """
    B, D_in = x.shape
    assert params[-1].shape[-1] == output_size

    # Batch tile: multiple of 8 sublanes, as large as useful (per-grid-step
    # overhead ~0.35 us; 512-1024 row tiles sit near the HBM roofline).
    block_b = _round_up(max(int(block_b), 8), 8)
    TB = min(block_b, _round_up(B, 8))
    # v7x has 2 TensorCores per chip: give large batches >= 2 grid steps so
    # the "parallel" batch axis can be sharded across both cores.
    if B >= 16:
        TB = min(TB, _round_up(pl.cdiv(B, 2), 8))
    nb = pl.cdiv(B, TB)
    # NOTE: when B % TB != 0 the last tile's out-of-bounds rows hold
    # unspecified data. Every op here is row-wise, so valid rows stay correct
    # and OOB rows are dropped on store; keep future edits row-wise too.

    x_spec = pl.BlockSpec((TB, D_in), lambda i: (i, 0))
    # Exact-width (unpadded) output block: last dim == full array dim, so the
    # store writes only B*output_size elements (no 128-lane padding, no slice).
    out_spec = pl.BlockSpec((TB, output_size), lambda i: (i, 0))
    # Weights/biases: full-array blocks, constant index_map -> resident in
    # VMEM across all batch-grid iterations.
    param_specs = [pl.BlockSpec(p.shape, lambda i: (0, 0)) for p in params]

    # Cost hint for XLA's scheduler.
    flops = sum(2 * B * w.shape[0] * w.shape[1] for w in params[0::2])
    transcendentals = B * output_size                     # softmax exp
    if complexity == 3:
        transcendentals += 3 * B * params[2].shape[-1]    # three tanh layers
    bytes_accessed = int(
        x.size * x.dtype.itemsize
        + sum(p.size * p.dtype.itemsize for p in params)
        + B * output_size * x.dtype.itemsize)
    cost = pl.CostEstimate(flops=int(flops), transcendentals=int(transcendentals),
                           bytes_accessed=bytes_accessed)

    # Explicit scoped-VMEM budget: double-buffered params + double-buffered
    # x/out tiles, with headroom; capped at v7x's 64 MiB physical VMEM and
    # raised above v5e's 16 MiB scoped default when needed.
    param_bytes = sum(p.size * p.dtype.itemsize for p in params)
    tile_bytes = (TB * D_in + TB * output_size) * x.dtype.itemsize
    footprint = 2 * param_bytes + 2 * tile_bytes
    vmem_limit = int(min(64 * 2 ** 20, max(4 * 2 ** 20, 4 * footprint)))

    return pl.pallas_call(
        _KERNELS[complexity],
        out_shape=jax.ShapeDtypeStruct((B, output_size), x.dtype),
        grid=(nb,),
        in_specs=[x_spec] + param_specs,
        out_specs=out_spec,
        compiler_params=pltpu.CompilerParams(
            dimension_semantics=("parallel",),   # batch axis -> dual-TC shard
            vmem_limit_bytes=vmem_limit),
        cost_estimate=cost,
    )(x, *params)


# ---------------------------------------------------------------------------
# Parameter init (mimics nn.Linear default uniform(-1/sqrt(fan_in))), one-time
# kernel prep (bf16 weights), and a pure-JAX fp32 reference matching the
# PyTorch forward exactly.
# ---------------------------------------------------------------------------
def _linear_params(key, fan_in, fan_out, dtype=jnp.float32):
    kw, kb = jax.random.split(key)
    bound = 1.0 / math.sqrt(fan_in)
    w = jax.random.uniform(kw, (fan_in, fan_out), dtype, -bound, bound)
    b = jax.random.uniform(kb, (1, fan_out), dtype, -bound, bound)
    return w, b


def init_policy_params(key, input_size, hidden_size, output_size, complexity):
    """fp32 reference parameters; weights pre-transposed to [in, out]."""
    if complexity == 1:
        dims = [(input_size, output_size)]
    elif complexity == 2:
        dims = [(input_size, hidden_size[0]), (hidden_size[0], output_size)]
    else:
        # PyTorch fc3/fc4 are Linear(H0, H1) applied to H1-sized activations;
        # this only type-checks when H0 == H1 (same constraint as the spec).
        assert hidden_size[0] == hidden_size[1], \
            "complexity=3 forward requires hidden_size[0] == hidden_size[1]"
        dims = [(input_size, hidden_size[0]),
                (hidden_size[0], hidden_size[1]),
                (hidden_size[0], hidden_size[1]),
                (hidden_size[0], hidden_size[1]),
                (hidden_size[1], output_size)]
    keys = jax.random.split(key, len(dims))
    layers = [_linear_params(k, fi, fo) for k, (fi, fo) in zip(keys, dims)]
    return tuple(p for layer in layers for p in layer)


def prepare_policy_params(params):
    """One-time kernel prep: weights -> bf16 MXU operands; biases stay f32."""
    return tuple(p.astype(jnp.bfloat16) if i % 2 == 0 else p
                 for i, p in enumerate(params))


def policy_reference(x, params, complexity):
    """Pure-JAX fp32 reference with the exact PyTorch semantics."""
    pairs = [(params[i], params[i + 1]) for i in range(0, len(params), 2)]
    if complexity == 1:
        (w, b), = pairs
        return jax.nn.softmax(x @ w + b, axis=-1)
    if complexity == 2:
        (w1, b1), (w2, b2) = pairs
        return jax.nn.softmax((x @ w1 + b1) @ w2 + b2, axis=-1)
    (w1, b1), (w2, b2), (w3, b3), (w4, b4), (w5, b5) = pairs
    h = jnp.maximum(x @ w1 + b1, 0.0)
    h = jnp.tanh(h @ w2 + b2)
    h = jnp.tanh(h @ w3 + b3)
    h = jnp.tanh(h @ w4 + b4)
    return jax.nn.softmax(h @ w5 + b5, axis=-1)


if __name__ == "__main__":
    batch = 8
    input_size = 32
    hidden_size = [64, 64]
    output_size = 8

    key = jax.random.PRNGKey(0)
    kx, kp = jax.random.split(key)
    x = jax.random.normal(kx, (batch, input_size), dtype=jnp.float32)

    for complexity in (1, 2, 3):
        params = init_policy_params(kp, input_size, hidden_size,
                                    output_size, complexity)
        kparams = prepare_policy_params(params)

        out = jax.block_until_ready(
            policy_forward(x, kparams, complexity, output_size))
        ref = policy_reference(x, params, complexity)

        assert out.shape == (batch, output_size)
        # bf16 MXU operands + approx reciprocal -> loosened tolerance vs the
        # fp32 PyTorch-equivalent reference.
        assert jnp.allclose(out, ref, atol=2e-2, rtol=2e-2), \
            f"mismatch vs reference (complexity={complexity})"
        # softmax rows sum to ~1 (approx reciprocal is near-exact)
        assert jnp.allclose(jnp.sum(out, axis=-1), 1.0, atol=1e-2)

    print("KERNEL_OK")
</pallas_src>

<mosaic_0001>
module attributes {stable_mosaic.version = 11 : i64} {
  func.func @_policy_kernel_c1(%arg0: i32, %arg1: memref<8x32xf32, #tpu.memory_space<vmem>>, %arg2: memref<32x8xbf16, #tpu.memory_space<vmem>>, %arg3: memref<1x8xf32, #tpu.memory_space<vmem>>, %arg4: memref<8x8xf32, #tpu.memory_space<vmem>>) attributes {dimension_semantics = [#tpu.dimension_semantics<parallel>], iteration_bounds = array<i64: 1>, scalar_prefetch = 0 : i64, scratch_operands = 0 : i64, tpu.core_type = #tpu.core_type<tc>, window_params = [{transform_indices = @transform_0, window_bounds = array<i64: 8, 32>}, {pipeline_mode = #tpu.pipeline_mode<synchronous>, transform_indices = @transform_1, window_bounds = array<i64: 32, 8>}, {pipeline_mode = #tpu.pipeline_mode<synchronous>, transform_indices = @transform_2, window_bounds = array<i64: 1, 8>}, {transform_indices = @transform_3, window_bounds = array<i64: 8, 8>}]} {
    %c0 = arith.constant 0 : index
    %c0_0 = arith.constant 0 : index
    %0 = vector.load %arg1[%c0, %c0_0] : memref<8x32xf32, #tpu.memory_space<vmem>>, vector<8x32xf32>
    %1 = arith.truncf %0 : vector<8x32xf32> to vector<8x32xbf16>
    %c0_1 = arith.constant 0 : index
    %c0_2 = arith.constant 0 : index
    %2 = vector.load %arg2[%c0_1, %c0_2] : memref<32x8xbf16, #tpu.memory_space<vmem>>, vector<32x8xbf16>
    %cst = arith.constant dense<0.000000e+00> : vector<8x8xf32>
    %3 = tpu.matmul %1, %2, %cst {dimension_numbers = #tpu.dot_dimension_numbers<[1], [0], [0], [1], [0, 0, 1, 1], [], []>} : vector<8x32xbf16>, vector<32x8xbf16>, vector<8x8xf32> -> vector<8x8xf32>
    %c0_3 = arith.constant 0 : index
    %c0_4 = arith.constant 0 : index
    %4 = vector.load %arg3[%c0_3, %c0_4] : memref<1x8xf32, #tpu.memory_space<vmem>>, vector<1x8xf32>
    %5 = vector.broadcast %4 : vector<1x8xf32> to vector<8x8xf32>
    %6 = arith.addf %3, %5 : vector<8x8xf32>
    %cst_5 = arith.constant dense<0xFF800000> : vector<8xf32>
    %7 = vector.multi_reduction <maximumf>, %6, %cst_5 [1] : vector<8x8xf32> to vector<8xf32>
    %8 = vector.shape_cast %7 : vector<8xf32> to vector<8x1xf32>
    %9 = vector.broadcast %8 : vector<8x1xf32> to vector<8x8xf32>
    %10 = arith.subf %6, %9 : vector<8x8xf32>
    %11 = math.exp %10 : vector<8x8xf32>
    %cst_6 = arith.constant dense<0.000000e+00> : vector<8xf32>
    %12 = vector.multi_reduction <add>, %11, %cst_6 [1] : vector<8x8xf32> to vector<8xf32>
    %13 = vector.shape_cast %12 : vector<8xf32> to vector<8x1xf32>
    %14 = tpu.reciprocal %13 {approx = true} : vector<8x1xf32> -> vector<8x1xf32>
    %15 = vector.broadcast %14 : vector<8x1xf32> to vector<8x8xf32>
    %16 = arith.mulf %11, %15 : vector<8x8xf32>
    %c0_7 = arith.constant 0 : index
    %c0_8 = arith.constant 0 : index
    %17 = vector.load %arg4[%c0_7, %c0_8] : memref<8x8xf32, #tpu.memory_space<vmem>>, vector<8x8xf32>
    tpu.vector_store %arg4[%c0_7, %c0_8], %16 {strides = array<i32>} : memref<8x8xf32, #tpu.memory_space<vmem>>, vector<8x8xf32>,
    return
  }
  func.func @transform_0(%arg0: i32) -> (i32, i32) {
    %c0_i32 = arith.constant 0 : i32
    %c0_i32_0 = arith.constant 0 : i32
    return %arg0, %c0_i32 : i32, i32
  }
  func.func @transform_1(%arg0: i32) -> (i32, i32) {
    %c0_i32 = arith.constant 0 : i32
    %c0_i32_0 = arith.constant 0 : i32
    %c0_i32_1 = arith.constant 0 : i32
    return %c0_i32, %c0_i32_0 : i32, i32
  }
  func.func @transform_2(%arg0: i32) -> (i32, i32) {
    %c0_i32 = arith.constant 0 : i32
    %c0_i32_0 = arith.constant 0 : i32
    %c0_i32_1 = arith.constant 0 : i32
    return %c0_i32, %c0_i32_0 : i32, i32
  }
  func.func @transform_3(%arg0: i32) -> (i32, i32) {
    %c0_i32 = arith.constant 0 : i32
    %c0_i32_0 = arith.constant 0 : i32
    return %arg0, %c0_i32 : i32, i32
  }
}

</mosaic_0001>

<bundles_post_ra>
// kernel: tpu_custom_call.1
= control target key start
LH: loop header
LB: loop body
LE: loop exit
PB: predicated region body
PF: predicated region fallthrough
CT: control target
= control target key end

     0   :  { %v160_v1 = vmov 0.0   ;;  %vm161_vm0 = vmmov 0   ;;  %s210_s0 = inlined_call_operand.vmem [shape: f32[8,32], index: 0, kind: input, shape index: {}]   ;;  %s211_s1 = inlined_call_operand.vmem [shape: bf16[32,8], index: 1, kind: input, shape index: {}]   ;;  %s212_s2 = inlined_call_operand.vmem [shape: f32[1,8], index: 2, kind: input, shape index: {}]   ;;  %s213_s3 = inlined_call_operand.hbm [shape: f32[8,8], index: 3, kind: output, shape index: {}]  }
   0x1   :  { %v130_v0 = vld [vmem:[%s211_s1] sm:$0xff]   ;;  %119 = vmatprep.subr.bf16.mxu0 %v160_v1  ;;  %v131_v2 = vld [vmem:[%s211_s1 + $0x8] sm:$0xff]   ;;  %123 = vmatprep.mubr.msk.bf16.mxu0 %vm161_vm0, %v160_v1 }
   0x2   :  { %120 = vmatpush3.bf16.msra.mxu0 %v130_v0  ;;  %v16_v3 = vld [vmem:[%s210_s0] sm:$0xff] }
   0x3   :  { %8 = vsyncpa [#allocation3], 0  ;;  %121 = vmatprep.subr.bf16.mxu0 %v160_v1  ;;  %v17_v4 = vpack.c.bf16 %v16_v3, %v16_v3  ;;  %vm41_vm1 = vcmask 261120   ;;  %v112_v5 = vld [vmem:[%s212_s2] ss:$0 sm:$0xff]  ;;  %vm85_vm2 = vcmask 64512  }
   0x4   :  { %s162_s0 = smov [#allocation2]  }
   0x5   :  { %s104_s1 = sshll.u32 %s162_s0, 4  ;;  %s105_s1 = int_to_ptr.vmem [resolvable:$true] %s104_s1 }
   0x6   :  { %122 = vmatpush3.bf16.msra.mxu0 %v131_v2  ;;  %s136_s2 = scalar_lea.vmem %s105_s1, 128  ;;  %p141_p1 = scmp.lt.s32.totalorder %s105_s1, %s105_s1 }
   0x7   :  { %p137_p0 = scmp.ne.s32.totalorder %s105_s1, %s136_s2  ;;  %p142_p2 = scmp.lt.s32.totalorder %s136_s2, %s136_s2 }
   0x9   :  { %124 = vmatmul.mubr.msk.bf16.vlgmr.msra.gmra.mrb[0].mxu0 %vm41_vm1, %v17_v4  ;;  %p143_p3 = por %p142_p2, %p141_p1 }
   0xb   :  { %p144_p4 = pnand %p143_p3, %p137_p0 }
  0xdc   :  { %v79_v6 = vpop.f32.mrb[0].mxu0 }
  0xdd   :  { %v80_v7 = vadd.f32 %v112_v5, %v79_v6  ;;  %v125_v8 = vpop.f32.mrb[1].mxu0 }
  0xde   :  { %v82_v9 = vpop.f32.mrb[2].mxu0 }
  0xdf   :  { %v126_v10 = vpop.f32.mrb[3].mxu0  ;;  %v86_v11 = vsel %vm85_vm2, %v80_v7, -inf }
  0xe0   :  { %87 = vmax.xlane.f32.xlu0 %v86_v11 }
 0x16d   :  { %v88_v12 = vpop.xlane.xlu0 %87 }
 0x16e   :  { %v89_v13 = vsub.f32 %v80_v7, %v88_v12 }
 0x170   :  { %v90_v14 = vmul.f32 1.442695, %v89_v13 }
 0x172   :  { %132 = vpow2.f32 %v90_v14 }
 0x17c   :  { %v133_v15 = vpop.eup %132 }
 0x17d   :  { %v92_v16 = vsel %vm85_vm2, %v133_v15, 0.0 }
 0x17e   :  { %93 = vadd.xlane.f32.xlu0 %v92_v16 }
 0x20b   :  { %v94_v17 = vpop.xlane.xlu0 %93 }
 0x20c   :  { %134 = vrcp.f32 %v94_v17 }
 0x216   :  { %v135_v18 = vpop.eup %134 }
 0x217   :  { %v96_v19 = vmul.f32 %v135_v18, %v133_v15 }
 0x219   :  { %97 = vst.msk [vmem:[#allocation2] sm:$0xff] %vm85_vm2, %v96_v19 }
 0x21a   :  { %147 = shalt.err (!%p144_p4)
}
 0x21b   :  { %s148_s22 = scalar_lea.hbm %s213_s3, 128 }
 0x21c   :  { %p149_p5 = scmp.ne.s32.totalorder %s213_s3, %s148_s22  ;;  %p152_p6 = scmp.lt.u32.totalorder %s148_s22, %s213_s3 }
 0x21e   :  { %p154_p7 = pnand %p152_p6, %p149_p5 }
 0x220   :  { %157 = shalt.err (!%p154_p7)
}
 0x221   :  { %107 = dma.vmem_to_hbm [thread:$0]  %s105_s1, 128, %s213_s3, [#allocation3]  }
 0x222   :  { %158 = dma.done.wait [#allocation3], 128  }
 0x223   :  { %159 = vsyncadd [#allocation3], 4294967168 }
 0x224   :  { %111 = vsyncpa [#allocation3], 1 }

</bundles_post_ra>
